<compile_context>
chip_gen: v6e
topology: v6e:2x2x1
jax: 0.10.0
libtpu: 0.0.40
codegen_flags: <defaults>
</compile_context>

<pallas_src>
import functools

import jax
import jax.numpy as jnp
from jax.experimental import pallas as pl
from jax.experimental.pallas import tpu as pltpu


def _num_tensorcores():
    """Best-effort TensorCore count reachable by one pallas_call on this chip.

    2 on dual-TC / megacore chips (v7x, v4, v5p), 1 on v5e / v6e.  Falls back
    to 1 (never wastes ghost blocks) when the generation cannot be determined.
    """
    try:
        info = pltpu.get_tpu_info()
        for name in ("num_cores", "core_count", "num_tensorcores",
                     "tensorcores_per_chip", "cores_per_chip"):
            v = getattr(info, name, None)
            if isinstance(v, int) and v > 0:
                return v
    except Exception:
        pass
    try:
        kind = jax.devices()[0].device_kind.lower().replace(" ", "")
    except Exception:
        return 1
    if any(tag in kind for tag in ("v7", "tpu7", "v4", "v5p")):
        return 2
    return 1


def _sc_loss_kernel(x_ref, y_ref, num_ref, den_ref, num_acc, den_acc,
                    *, total_rows, tile_rows, lanes):
    p = pl.program_id(0)          # parallel (core-split) axis
    j = pl.program_id(1)          # reduction axis
    nj = pl.num_programs(1)

    @pl.when(j == 0)
    def _():
        num_acc[...] = jnp.zeros_like(num_acc)
        den_acc[...] = jnp.zeros_like(den_acc)

    blk = p * nj + j              # un-clamped global block index

    x = x_ref[...].astype(jnp.float32)
    y = y_ref[...].astype(jnp.float32)

    groups = tile_rows // 8

    def accumulate(xv, yv):
        d = yv - xv
        # Fold the row axis onto 8 sublanes with plain vreg adds (VPU); the
        # reshape splits at an aligned (8, lane) tile boundary so it is a
        # view, not a relayout copy.  The expensive cross-lane reduce stays
        # out of the hot loop (done once in the wrapper).
        num_acc[...] += jnp.sum((d * d).reshape(groups, 8, lanes), axis=0)
        den_acc[...] += jnp.sum((yv * yv).reshape(groups, 8, lanes), axis=0)

    # Fast path: block fully inside the data -> zero mask ops in steady state.
    is_full = (blk + 1) * tile_rows <= total_rows

    @pl.when(is_full)
    def _():
        accumulate(x, y)

    # Slow path: the partial tail block and any clamped "ghost" blocks from
    # the core split.  Ghost blocks (blk >= nblocks) start at or past
    # total_rows and therefore mask entirely to zero, so re-reading the
    # clamped block stays correct.
    @pl.when(jnp.logical_not(is_full))
    def _():
        row = (jax.lax.broadcasted_iota(jnp.int32, (tile_rows, lanes), 0)
               + blk * tile_rows)
        valid = row < total_rows
        accumulate(jnp.where(valid, x, 0.0), jnp.where(valid, y, 0.0))

    @pl.when(j == nj - 1)
    def _():
        # Lane-dense per-core partials; the tiny final reduce happens in the
        # wrapper.
        num_ref[...] = num_acc[...]
        den_ref[...] = den_acc[...]


def spectral_convergence_loss(x_mag, y_mag, *, tile_rows=None,
                              target_block_bytes=4 * 1024 * 1024,
                              force_num_cores=None):
    """x_mag, y_mag: (B, #frames, #freq_bins). Returns scalar loss (float32)."""
    assert x_mag.shape == y_mag.shape
    B, T, F = x_mag.shape
    N = B * T * F

    itemsize = jnp.dtype(x_mag.dtype).itemsize
    # Native sublane tile of the storage dtype: 8 (f32), 16 (bf16/fp16),
    # 32 (int8/fp8).
    sub = 8 * max(1, 4 // itemsize)

    # Choose a lane-dense 2-D streaming view (R, L).  The reduction is over
    # all elements, so the shape is free; dense lanes (L % 128 == 0) avoid
    # padded vregs / VMEM when F is not a multiple of 128.  All reshapes here
    # are free (row-major, no copy, no pad).
    if F % 128 == 0:
        R, L = B * T, F
    else:
        L = 0
        for cand in (512, 256, 128):
            if N % cand == 0:
                L = cand
                break
        if L:
            R = N // L
        else:
            R, L = B * T, F        # last resort: lanes pad to 128 in VMEM
    x2 = x_mag.reshape(R, L)
    y2 = y_mag.reshape(R, L)

    # Row tile: ~target_block_bytes per input per step, rounded to the
    # dtype's native sublane tile and clamped to the (rounded-up) data extent.
    if tile_rows is None:
        tile_rows = target_block_bytes // (L * itemsize)
    tile_rows = max(sub, (int(tile_rows) // sub) * sub)
    r_cap = ((R + sub - 1) // sub) * sub
    tile_rows = min(tile_rows, r_cap)

    nblocks = pl.cdiv(R, tile_rows)

    # Generation-aware core split: 2 TCs on v7x (and megacore v4/v5p),
    # 1 on v5e/v6e.  Clamp to nblocks so tiny inputs never create ghost work.
    P = force_num_cores if force_num_cores is not None else _num_tensorcores()
    P = max(1, min(int(P), nblocks))
    J = pl.cdiv(nblocks, P)

    def in_map(p, j):
        # Clamp to a valid block; the kernel masks any over-read (ghost) rows.
        return (jnp.minimum(p * J + j, nblocks - 1), 0)

    kernel = functools.partial(
        _sc_loss_kernel, total_rows=R, tile_rows=tile_rows, lanes=L)

    num_parts, den_parts = pl.pallas_call(
        kernel,
        out_shape=(jax.ShapeDtypeStruct((P * 8, L), jnp.float32),
                   jax.ShapeDtypeStruct((P * 8, L), jnp.float32)),
        grid_spec=pltpu.PrefetchScalarGridSpec(
            num_scalar_prefetch=0,
            grid=(P, J),
            in_specs=[
                pl.BlockSpec((tile_rows, L), in_map),
                pl.BlockSpec((tile_rows, L), in_map),
            ],
            out_specs=[
                pl.BlockSpec((8, L), lambda p, j: (p, 0)),
                pl.BlockSpec((8, L), lambda p, j: (p, 0)),
            ],
            scratch_shapes=[
                pltpu.VMEM((8, L), jnp.float32),
                pltpu.VMEM((8, L), jnp.float32),
            ],
        ),
        compiler_params=pltpu.CompilerParams(
            dimension_semantics=("parallel", "arbitrary"),
            vmem_limit_bytes=32 * 1024 * 1024,
        ),
    )(x2, y2)

    num = jnp.sum(num_parts)
    den = jnp.sum(den_parts)
    # NOTE: den == 0 yields NaN, matching torch.norm(y-x)/torch.norm(y).
    return jnp.sqrt(num) / jnp.sqrt(den)


def _ref_loss(x_mag, y_mag):
    x = x_mag.astype(jnp.float32).reshape(-1)
    y = y_mag.astype(jnp.float32).reshape(-1)
    return jnp.linalg.norm(y - x) / jnp.linalg.norm(y)


if __name__ == "__main__":
    key = jax.random.PRNGKey(0)

    # Case 1: (B, #frames, #freq_bins) magnitude spectrograms, lane-aligned F.
    kx, ky, key = jax.random.split(key, 3)
    x_mag = jnp.abs(jax.random.normal(kx, (2, 16, 128), dtype=jnp.float32))
    y_mag = jnp.abs(jax.random.normal(ky, (2, 16, 128), dtype=jnp.float32))
    loss = jax.block_until_ready(spectral_convergence_loss(x_mag, y_mag))
    ref = _ref_loss(x_mag, y_mag)
    assert jnp.allclose(loss, ref, rtol=1e-5, atol=1e-6), (loss, ref)

    # Case 2: F not a multiple of 128 and total elements not flattenable
    # lane-dense -> padded-lane fallback view + masked tail rows.
    kx, ky, key = jax.random.split(key, 3)
    x_mag = jnp.abs(jax.random.normal(kx, (3, 10, 80), dtype=jnp.float32))
    y_mag = jnp.abs(jax.random.normal(ky, (3, 10, 80), dtype=jnp.float32))
    loss = jax.block_until_ready(spectral_convergence_loss(x_mag, y_mag))
    ref = _ref_loss(x_mag, y_mag)
    assert jnp.allclose(loss, ref, rtol=1e-5, atol=1e-6), (loss, ref)

    # Case 3: multi-step reduction grid + forced 2-core split (exercises the
    # clamped ghost block and the masked tail alongside full blocks).
    kx, ky, key = jax.random.split(key, 3)
    x_mag = jnp.abs(jax.random.normal(kx, (2, 37, 128), dtype=jnp.float32))
    y_mag = jnp.abs(jax.random.normal(ky, (2, 37, 128), dtype=jnp.float32))
    loss = jax.block_until_ready(
        spectral_convergence_loss(x_mag, y_mag, tile_rows=16,
                                  force_num_cores=2))
    ref = _ref_loss(x_mag, y_mag)
    assert jnp.allclose(loss, ref, rtol=1e-5, atol=1e-6), (loss, ref)

    # Case 4: bf16 storage (16-row native sublane tile), multi-block grid,
    # forced 2-core split, partial tail block.
    kx, ky, key = jax.random.split(key, 3)
    x_mag = jnp.abs(jax.random.normal(kx, (2, 50, 256))).astype(jnp.bfloat16)
    y_mag = jnp.abs(jax.random.normal(ky, (2, 50, 256))).astype(jnp.bfloat16)
    loss = jax.block_until_ready(
        spectral_convergence_loss(x_mag, y_mag, tile_rows=16,
                                  force_num_cores=2))
    ref = _ref_loss(x_mag, y_mag)
    assert jnp.allclose(loss, ref, rtol=1e-4, atol=1e-6), (loss, ref)

    print("KERNEL_OK")
</pallas_src>

<mosaic_0001>
module attributes {stable_mosaic.version = 11 : i64} {
  func.func @_sc_loss_kernel(%arg0: i32, %arg1: i32, %arg2: memref<32x128xf32, #tpu.memory_space<vmem>>, %arg3: memref<32x128xf32, #tpu.memory_space<vmem>>, %arg4: memref<8x128xf32, #tpu.memory_space<vmem>>, %arg5: memref<8x128xf32, #tpu.memory_space<vmem>>, %arg6: memref<8x128xf32, #tpu.memory_space<vmem>>, %arg7: memref<8x128xf32, #tpu.memory_space<vmem>>) attributes {dimension_semantics = [#tpu.dimension_semantics<parallel>, #tpu.dimension_semantics<arbitrary>], iteration_bounds = array<i64: 1, 1>, scalar_prefetch = 0 : i64, scratch_operands = 2 : i64, tpu.core_type = #tpu.core_type<tc>, window_params = [{transform_indices = @transform_0, window_bounds = array<i64: 32, 128>}, {transform_indices = @transform_1, window_bounds = array<i64: 32, 128>}, {transform_indices = @transform_2, window_bounds = array<i64: 8, 128>}, {transform_indices = @transform_3, window_bounds = array<i64: 8, 128>}]} {
    %c0_i32 = arith.constant 0 : i32
    %0 = arith.cmpi eq, %arg1, %c0_i32 : i32
    %1 = arith.extui %0 : i1 to i32
    %c0_i32_0 = arith.constant 0 : i32
    %2 = arith.cmpi ne, %1, %c0_i32_0 : i32
    scf.if %2 {
      %cst = arith.constant 0.000000e+00 : f32
      %18 = vector.broadcast %cst : f32 to vector<8x128xf32>
      %c0_10 = arith.constant 0 : index
      %c0_11 = arith.constant 0 : index
      %19 = vector.load %arg6[%c0_10, %c0_11] : memref<8x128xf32, #tpu.memory_space<vmem>>, vector<8x128xf32>
      tpu.vector_store %arg6[%c0_10, %c0_11], %18 {strides = array<i32>} : memref<8x128xf32, #tpu.memory_space<vmem>>, vector<8x128xf32>,
      %cst_12 = arith.constant 0.000000e+00 : f32
      %20 = vector.broadcast %cst_12 : f32 to vector<8x128xf32>
      %c0_13 = arith.constant 0 : index
      %c0_14 = arith.constant 0 : index
      %21 = vector.load %arg7[%c0_13, %c0_14] : memref<8x128xf32, #tpu.memory_space<vmem>>, vector<8x128xf32>
      tpu.vector_store %arg7[%c0_13, %c0_14], %20 {strides = array<i32>} : memref<8x128xf32, #tpu.memory_space<vmem>>, vector<8x128xf32>,
    } else {
    }
    %c1_i32 = arith.constant 1 : i32
    %3 = arith.muli %arg0, %c1_i32 : i32
    %4 = arith.addi %3, %arg1 : i32
    %c0 = arith.constant 0 : index
    %c0_1 = arith.constant 0 : index
    %5 = vector.load %arg2[%c0, %c0_1] : memref<32x128xf32, #tpu.memory_space<vmem>>, vector<32x128xf32>
    %c0_2 = arith.constant 0 : index
    %c0_3 = arith.constant 0 : index
    %6 = vector.load %arg3[%c0_2, %c0_3] : memref<32x128xf32, #tpu.memory_space<vmem>>, vector<32x128xf32>
    %c1_i32_4 = arith.constant 1 : i32
    %7 = arith.addi %4, %c1_i32_4 : i32
    %c32_i32 = arith.constant 32 : i32
    %8 = arith.muli %7, %c32_i32 : i32
    %c32_i32_5 = arith.constant 32 : i32
    %9 = arith.cmpi sle, %8, %c32_i32_5 : i32
    %10 = arith.extui %9 : i1 to i32
    %c0_i32_6 = arith.constant 0 : i32
    %11 = arith.cmpi ne, %10, %c0_i32_6 : i32
    scf.if %11 {
      %18 = arith.subf %6, %5 : vector<32x128xf32>
      %c0_10 = arith.constant 0 : index
      %c0_11 = arith.constant 0 : index
      %19 = vector.load %arg6[%c0_10, %c0_11] : memref<8x128xf32, #tpu.memory_space<vmem>>, vector<8x128xf32>
      %20 = arith.mulf %18, %18 : vector<32x128xf32>
      %21 = vector.shape_cast %20 : vector<32x128xf32> to vector<4x8x128xf32>
      %cst = arith.constant dense<0.000000e+00> : vector<8x128xf32>
      %22 = vector.multi_reduction <add>, %21, %cst [0] : vector<4x8x128xf32> to vector<8x128xf32>
      %23 = arith.addf %19, %22 : vector<8x128xf32>
      %c0_12 = arith.constant 0 : index
      %c0_13 = arith.constant 0 : index
      %24 = vector.load %arg6[%c0_12, %c0_13] : memref<8x128xf32, #tpu.memory_space<vmem>>, vector<8x128xf32>
      tpu.vector_store %arg6[%c0_12, %c0_13], %23 {strides = array<i32>} : memref<8x128xf32, #tpu.memory_space<vmem>>, vector<8x128xf32>,
      %c0_14 = arith.constant 0 : index
      %c0_15 = arith.constant 0 : index
      %25 = vector.load %arg7[%c0_14, %c0_15] : memref<8x128xf32, #tpu.memory_space<vmem>>, vector<8x128xf32>
      %26 = arith.mulf %6, %6 : vector<32x128xf32>
      %27 = vector.shape_cast %26 : vector<32x128xf32> to vector<4x8x128xf32>
      %cst_16 = arith.constant dense<0.000000e+00> : vector<8x128xf32>
      %28 = vector.multi_reduction <add>, %27, %cst_16 [0] : vector<4x8x128xf32> to vector<8x128xf32>
      %29 = arith.addf %25, %28 : vector<8x128xf32>
      %c0_17 = arith.constant 0 : index
      %c0_18 = arith.constant 0 : index
      %30 = vector.load %arg7[%c0_17, %c0_18] : memref<8x128xf32, #tpu.memory_space<vmem>>, vector<8x128xf32>
      tpu.vector_store %arg7[%c0_17, %c0_18], %29 {strides = array<i32>} : memref<8x128xf32, #tpu.memory_space<vmem>>, vector<8x128xf32>,
    } else {
    }
    %true = arith.constant true
    %12 = arith.xori %9, %true : i1
    %13 = arith.extui %12 : i1 to i32
    %c0_i32_7 = arith.constant 0 : i32
    %14 = arith.cmpi ne, %13, %c0_i32_7 : i32
    scf.if %14 {
      %18 = tpu.iota {dimensions = array<i32: 0>} : vector<32x128xi32>
      %c32_i32_10 = arith.constant 32 : i32
      %19 = arith.muli %4, %c32_i32_10 : i32
      %20 = vector.broadcast %19 : i32 to vector<32x128xi32>
      %21 = arith.addi %18, %20 : vector<32x128xi32>
      %c32_i32_11 = arith.constant 32 : i32
      %22 = vector.broadcast %c32_i32_11 : i32 to vector<32x128xi32>
      %23 = arith.cmpi slt, %21, %22 : vector<32x128xi32>
      %cst = arith.constant 0.000000e+00 : f32
      %24 = vector.broadcast %cst : f32 to vector<32x128xf32>
      %25 = arith.select %23, %5, %24 : vector<32x128xi1>, vector<32x128xf32>
      %cst_12 = arith.constant 0.000000e+00 : f32
      %26 = vector.broadcast %cst_12 : f32 to vector<32x128xf32>
      %27 = arith.select %23, %6, %26 : vector<32x128xi1>, vector<32x128xf32>
      %28 = arith.subf %27, %25 : vector<32x128xf32>
      %c0_13 = arith.constant 0 : index
      %c0_14 = arith.constant 0 : index
      %29 = vector.load %arg6[%c0_13, %c0_14] : memref<8x128xf32, #tpu.memory_space<vmem>>, vector<8x128xf32>
      %30 = arith.mulf %28, %28 : vector<32x128xf32>
      %31 = vector.shape_cast %30 : vector<32x128xf32> to vector<4x8x128xf32>
      %cst_15 = arith.constant dense<0.000000e+00> : vector<8x128xf32>
      %32 = vector.multi_reduction <add>, %31, %cst_15 [0] : vector<4x8x128xf32> to vector<8x128xf32>
      %33 = arith.addf %29, %32 : vector<8x128xf32>
      %c0_16 = arith.constant 0 : index
      %c0_17 = arith.constant 0 : index
      %34 = vector.load %arg6[%c0_16, %c0_17] : memref<8x128xf32, #tpu.memory_space<vmem>>, vector<8x128xf32>
      tpu.vector_store %arg6[%c0_16, %c0_17], %33 {strides = array<i32>} : memref<8x128xf32, #tpu.memory_space<vmem>>, vector<8x128xf32>,
      %c0_18 = arith.constant 0 : index
      %c0_19 = arith.constant 0 : index
      %35 = vector.load %arg7[%c0_18, %c0_19] : memref<8x128xf32, #tpu.memory_space<vmem>>, vector<8x128xf32>
      %36 = arith.mulf %27, %27 : vector<32x128xf32>
      %37 = vector.shape_cast %36 : vector<32x128xf32> to vector<4x8x128xf32>
      %cst_20 = arith.constant dense<0.000000e+00> : vector<8x128xf32>
      %38 = vector.multi_reduction <add>, %37, %cst_20 [0] : vector<4x8x128xf32> to vector<8x128xf32>
      %39 = arith.addf %35, %38 : vector<8x128xf32>
      %c0_21 = arith.constant 0 : index
      %c0_22 = arith.constant 0 : index
      %40 = vector.load %arg7[%c0_21, %c0_22] : memref<8x128xf32, #tpu.memory_space<vmem>>, vector<8x128xf32>
      tpu.vector_store %arg7[%c0_21, %c0_22], %39 {strides = array<i32>} : memref<8x128xf32, #tpu.memory_space<vmem>>, vector<8x128xf32>,
    } else {
    }
    %c0_i32_8 = arith.constant 0 : i32
    %15 = arith.cmpi eq, %arg1, %c0_i32_8 : i32
    %16 = arith.extui %15 : i1 to i32
    %c0_i32_9 = arith.constant 0 : i32
    %17 = arith.cmpi ne, %16, %c0_i32_9 : i32
    scf.if %17 {
      %c0_10 = arith.constant 0 : index
      %c0_11 = arith.constant 0 : index
      %18 = vector.load %arg6[%c0_10, %c0_11] : memref<8x128xf32, #tpu.memory_space<vmem>>, vector<8x128xf32>
      %c0_12 = arith.constant 0 : index
      %c0_13 = arith.constant 0 : index
      %19 = vector.load %arg4[%c0_12, %c0_13] : memref<8x128xf32, #tpu.memory_space<vmem>>, vector<8x128xf32>
      tpu.vector_store %arg4[%c0_12, %c0_13], %18 {strides = array<i32>} : memref<8x128xf32, #tpu.memory_space<vmem>>, vector<8x128xf32>,
      %c0_14 = arith.constant 0 : index
      %c0_15 = arith.constant 0 : index
      %20 = vector.load %arg7[%c0_14, %c0_15] : memref<8x128xf32, #tpu.memory_space<vmem>>, vector<8x128xf32>
      %c0_16 = arith.constant 0 : index
      %c0_17 = arith.constant 0 : index
      %21 = vector.load %arg5[%c0_16, %c0_17] : memref<8x128xf32, #tpu.memory_space<vmem>>, vector<8x128xf32>
      tpu.vector_store %arg5[%c0_16, %c0_17], %20 {strides = array<i32>} : memref<8x128xf32, #tpu.memory_space<vmem>>, vector<8x128xf32>,
    } else {
    }
    return
  }
  func.func @transform_0(%arg0: i32, %arg1: i32) -> (i32, i32) {
    %c1_i32 = arith.constant 1 : i32
    %0 = arith.muli %arg0, %c1_i32 : i32
    %1 = arith.addi %0, %arg1 : i32
    %c0_i32 = arith.constant 0 : i32
    %2 = arith.minsi %1, %c0_i32 : i32
    %c0_i32_0 = arith.constant 0 : i32
    %c0_i32_1 = arith.constant 0 : i32
    return %2, %c0_i32_0 : i32, i32
  }
  func.func @transform_1(%arg0: i32, %arg1: i32) -> (i32, i32) {
    %c1_i32 = arith.constant 1 : i32
    %0 = arith.muli %arg0, %c1_i32 : i32
    %1 = arith.addi %0, %arg1 : i32
    %c0_i32 = arith.constant 0 : i32
    %2 = arith.minsi %1, %c0_i32 : i32
    %c0_i32_0 = arith.constant 0 : i32
    %c0_i32_1 = arith.constant 0 : i32
    return %2, %c0_i32_0 : i32, i32
  }
  func.func @transform_2(%arg0: i32, %arg1: i32) -> (i32, i32) {
    %c0_i32 = arith.constant 0 : i32
    %c0_i32_0 = arith.constant 0 : i32
    return %arg0, %c0_i32 : i32, i32
  }
  func.func @transform_3(%arg0: i32, %arg1: i32) -> (i32, i32) {
    %c0_i32 = arith.constant 0 : i32
    %c0_i32_0 = arith.constant 0 : i32
    return %arg0, %c0_i32 : i32, i32
  }
}

</mosaic_0001>

<bundles_post_ra>
// kernel: tpu_custom_call.1
= control target key start
LH: loop header
LB: loop body
LE: loop exit
PB: predicated region body
PF: predicated region fallthrough
CT: control target
= control target key end

     0   :  { %9 = vsyncpa [#allocation5], 0  ;;  %s332_s0 = inlined_call_operand.hbm [shape: f32[32,128], index: 0, kind: input, shape index: {}]   ;;  %s333_s1 = inlined_call_operand.hbm [shape: f32[32,128], index: 1, kind: input, shape index: {}]   ;;  %s334_s2 = inlined_call_operand.hbm [shape: f32[8,128], index: 2, kind: output, shape index: {0}]   ;;  %s335_s3 = inlined_call_operand.hbm [shape: f32[8,128], index: 3, kind: output, shape index: {1}]  }
   0x1   :  { %10 = vsyncpa [#allocation8], 0 }
   0x2   :  { %11 = vsyncpa [#allocation6], 0 }
   0x3   :  { %12 = vsyncpa [#allocation11], 0  ;;  %s294_s12 = smov [#allocation4]  }
   0x4   :  { %s24_s13 = sshll.u32 %s294_s12, 4  ;;  %s25_s13 = int_to_ptr.vmem [resolvable:$true] %s24_s13 }
   0x5   :  { %s214_s14 = scalar_lea.vmem %s25_s13, 512  ;;  %p219_p1 = scmp.lt.s32.totalorder %s25_s13, %s25_s13 }
   0x6   :  { %p215_p0 = scmp.ne.s32.totalorder %s25_s13, %s214_s14  ;;  %p220_p2 = scmp.lt.s32.totalorder %s214_s14, %s214_s14 }
   0x8   :  { %p221_p3 = por %p220_p2, %p219_p1 }
   0xa   :  { %p222_p4 = pnand %p221_p3, %p215_p0 }
   0xc   :  { %225 = shalt.err (!%p222_p4)
}
   0xd   :  { %s295_s15 = smov 128   ;;  %s296_s16 = smov 8  }
   0xe   :  { %30 = dma.hbm_to_vmem [thread:$0]  %s332_s0, 512, %s25_s13, [#allocation5], %s295_s15, %s295_s15, %s296_s16  }
   0xf   :  { %s297_s19 = smov [#allocation7]  }
  0x10   :  { %s42_s20 = sshll.u32 %s297_s19, 4  ;;  %s43_s20 = int_to_ptr.vmem [resolvable:$true] %s42_s20 }
  0x11   :  { %s234_s21 = scalar_lea.vmem %s43_s20, 512  ;;  %p239_p6 = scmp.lt.s32.totalorder %s43_s20, %s43_s20 }
  0x12   :  { %p235_p5 = scmp.ne.s32.totalorder %s43_s20, %s234_s21  ;;  %p240_p7 = scmp.lt.s32.totalorder %s234_s21, %s234_s21 }
  0x14   :  { %p241_p8 = por %p240_p7, %p239_p6 }
  0x16   :  { %p242_p9 = pnand %p241_p8, %p235_p5 }
  0x18   :  { %245 = shalt.err (!%p242_p9)
}
  0x19   :  { %48 = dma.hbm_to_vmem [thread:$0]  %s333_s1, 512, %s43_s20, [#allocation8], %s295_s15, %s295_s15, %s296_s16  }
  0x1a   :  { %286 = dma.done.wait [#allocation5], 512  }
  0x1b   :  { %287 = vsyncadd [#allocation5], 4294966784 }
  0x1c   :  { %288 = dma.done.wait [#allocation8], 512  }
  0x1d   :  { %289 = vsyncadd [#allocation8], 4294966784  ;;  %v70_v0 = vld [vmem:[#allocation4] sm:$0xff]  ;;  %v71_v1 = vld [vmem:[#allocation4 + $0x8] sm:$0xff]  ;;  %s298_s0 = smov [#allocation10]   ;;  %s299_s24 = smov [#allocation9]  }
  0x1e   :  { %v72_v2 = vld [vmem:[#allocation4 + $0x10] sm:$0xff]  ;;  %v73_v3 = vld [vmem:[#allocation4 + $0x18] sm:$0xff]  ;;  %v74_v4 = vld [vmem:[#allocation7] sm:$0xff]  ;;  %s182_s1 = sshll.u32 %s298_s0, 4  ;;  %s172_s25 = sshll.u32 %s299_s24, 4  ;;  %s183_s1 = int_to_ptr.vmem [resolvable:$true] %s182_s1  ;;  %s173_s25 = int_to_ptr.vmem [resolvable:$true] %s172_s25 }
  0x1f   :  { %v75_v5 = vld [vmem:[#allocation7 + $0x8] sm:$0xff]  ;;  %v76_v6 = vld [vmem:[#allocation7 + $0x10] sm:$0xff]  ;;  %v77_v7 = vld [vmem:[#allocation7 + $0x18] sm:$0xff]  ;;  %v84_v8 = vsub.f32 %v74_v4, %v70_v0  ;;  %v99_v10 = vmul.f32 %v74_v4, %v74_v4  ;;  %s246_s26 = scalar_lea.vmem %s183_s1, 128  ;;  %p251_p11 = scmp.lt.s32.totalorder %s183_s1, %s183_s1 }
  0x20   :  { %v85_v9 = vsub.f32 %v75_v5, %v71_v1  ;;  %v100_v11 = vmul.f32 %v75_v5, %v75_v5  ;;  %v86_v12 = vsub.f32 %v76_v6, %v72_v2  ;;  %v87_v13 = vsub.f32 %v77_v7, %v73_v3  ;;  %p247_p10 = scmp.ne.s32.totalorder %s183_s1, %s246_s26  ;;  %p252_p12 = scmp.lt.s32.totalorder %s246_s26, %s246_s26 }
  0x21   :  { %v101_v14 = vmul.f32 %v76_v6, %v76_v6  ;;  %v89_v15 = vmul.f32 %v84_v8, %v84_v8  ;;  %v102_v17 = vmul.f32 %v77_v7, %v77_v7 }
  0x22   :  { %v90_v16 = vmul.f32 %v85_v9, %v85_v9  ;;  %v103_v18 = vadd.f32 %v100_v11, %v99_v10  ;;  %v91_v19 = vmul.f32 %v86_v12, %v86_v12  ;;  %v92_v20 = vmul.f32 %v87_v13, %v87_v13  ;;  %p253_p13 = por %p252_p12, %p251_p11 }
  0x24   :  { %v93_v21 = vadd.f32 %v90_v16, %v89_v15  ;;  %v104_v22 = vadd.f32 %v103_v18, %v101_v14  ;;  %p254_p0 = pnand %p253_p13, %p247_p10 }
  0x26   :  { %v94_v23 = vadd.f32 %v93_v21, %v91_v19  ;;  %v105_v24 = vadd.f32 %v104_v22, %v102_v17 }
  0x28   :  { %v95_v25 = vadd.f32 %v94_v23, %v92_v20  ;;  %165 = vst [vmem:[#allocation10] sm:$0xff] %v105_v24 }
  0x29   :  { %257 = shalt.err (!%p254_p0)
}
  0x2a   :  { %185 = dma.vmem_to_hbm [thread:$0]  %s183_s1, 128, %s335_s3, [#allocation11]   ;;  %163 = vst [vmem:[#allocation9] sm:$0xff] %v95_v25 }
  0x2b   :  { %s266_s29 = scalar_lea.vmem %s173_s25, 128  ;;  %p271_p2 = scmp.lt.s32.totalorder %s173_s25, %s173_s25 }
  0x2c   :  { %p267_p1 = scmp.ne.s32.totalorder %s173_s25, %s266_s29  ;;  %p272_p3 = scmp.lt.s32.totalorder %s266_s29, %s266_s29 }
  0x2e   :  { %p273_p4 = por %p272_p3, %p271_p2 }
  0x30   :  { %p274_p5 = pnand %p273_p4, %p267_p1 }
  0x32   :  { %277 = shalt.err (!%p274_p5)
}
  0x33   :  { %175 = dma.vmem_to_hbm [thread:$0]  %s173_s25, 128, %s334_s2, [#allocation6]  }
  0x34   :  { %290 = dma.done.wait [#allocation6], 128  }
  0x35   :  { %291 = vsyncadd [#allocation6], 4294967168 }
  0x36   :  { %292 = dma.done.wait [#allocation11], 128  }
  0x37   :  { %293 = vsyncadd [#allocation11], 4294967168 }
  0x38   :  { %192 = vsyncpa [#allocation5], 1 }
  0x39   :  { %193 = vsyncpa [#allocation8], 1 }
  0x3a   :  { %194 = vsyncpa [#allocation6], 1 }
  0x3b   :  { %195 = vsyncpa [#allocation11], 1 }

</bundles_post_ra>
